<compile_context>
chip_gen: v5e
topology: v5e:2x2
jax: 0.10.0
libtpu: 0.0.40
codegen_flags: <defaults>
</compile_context>

<pallas_src>
import functools

import jax
import jax.numpy as jnp
from jax import lax
from jax.experimental import pallas as pl
from jax.experimental.pallas import tpu as pltpu

EPS = 1e-5
MOMENTUM = 0.9
_SUBLANE = 8


def _round_up(x, m):
    return (x + m - 1) // m * m


def _cdiv(a, b):
    return -(-a // b)


def _vmem_budget():
    """Generation-gated (scoped_vmem_limit, per-pass tile byte target)."""
    cap = 64 * 1024 * 1024                      # conservative default (v7x-sized)
    try:
        cap = int(getattr(pltpu.get_tpu_info(), "vmem_capacity_bytes", cap))
    except Exception:
        pass
    if cap >= 100 * 1024 * 1024:                # v5e / v6e: 128 MiB physical VMEM
        return 96 * 1024 * 1024, 40 * 1024 * 1024
    # v7x: 64 MiB per TensorCore -> keep the total footprint <= ~48 MiB
    return 48 * 1024 * 1024, 20 * 1024 * 1024


def _choose_tiles(n, f):
    """Row tiles for the apply pass and the stats pass (both multiples of 8)."""
    vmem_limit, tile_target = _vmem_budget()
    row_bytes = f * 4                            # f32 math
    n8 = _round_up(n, _SUBLANE)

    # Apply pass: double-buffered x + y in flight  -> 4 * row_bytes per row.
    tn_apply = max(_SUBLANE, (tile_target // (4 * row_bytes)) // _SUBLANE * _SUBLANE)
    tn_apply = min(tn_apply, n8)
    # Keep >= ~4 apply tiles when N allows, so the "parallel" axis actually
    # shards across both TensorCores on v7x.
    if n8 >= 4 * _SUBLANE:
        tn_apply = min(tn_apply, max(_SUBLANE, _round_up(_cdiv(n8, 4), _SUBLANE)))

    # Stats pass: only x is streamed -> 2 * row_bytes per row in flight.
    tn_stats = max(_SUBLANE, (tile_target // (2 * row_bytes)) // _SUBLANE * _SUBLANE)
    tn_stats = min(tn_stats, n8)
    # Keep >= 2 stats tiles when N allows so each v7x core gets work.
    if n8 >= 2 * _SUBLANE:
        tn_stats = min(tn_stats, max(_SUBLANE, _round_up(_cdiv(n8, 2), _SUBLANE)))

    return tn_apply, tn_stats, vmem_limit, tile_target


# --------------------------------------------------------------------------
# Fused single-kernel training path (whole tensor resident in VMEM).
# --------------------------------------------------------------------------
def _bn_train_fused_kernel(x_ref, w_ref, b_ref, rm_ref, rv_ref,
                           y_ref, nrm_ref, nrv_ref, *, momentum, eps):
    x = x_ref[...].astype(jnp.float32)
    mean = jnp.mean(x)
    var = jnp.mean(jnp.square(x - mean))            # biased (unbiased=False)
    inv_std = lax.rsqrt(var + eps)
    scale = w_ref[...] * inv_std                    # (1, F)
    shift = b_ref[...] - mean * scale
    y_ref[...] = (x * scale + shift).astype(y_ref.dtype)
    nrm_ref[...] = momentum * rm_ref[...] + (1.0 - momentum) * mean
    nrv_ref[...] = momentum * rv_ref[...] + (1.0 - momentum) * var


# --------------------------------------------------------------------------
# Streaming pass 1 (training): per-core partial sum / sum-of-squares.
#   grid = (2, tiles_per_core); axis 0 is "parallel" (megacore on v7x),
#   axis 1 is the sequential reduction over row tiles.
# --------------------------------------------------------------------------
def _bn_stats_kernel(x_ref, sum_ref, sq_ref, acc_sum, acc_sq, *,
                     n_rows, tn, tiles_per_core):
    i = pl.program_id(0)          # core half
    j = pl.program_id(1)          # reduction step within the half

    @pl.when(j == 0)
    def _init():
        acc_sum[...] = jnp.zeros_like(acc_sum)
        acc_sq[...] = jnp.zeros_like(acc_sq)

    tile_idx = i * tiles_per_core + j
    valid = n_rows - tile_idx * tn                  # real rows in this tile (<=0 -> all masked)
    x = x_ref[...].astype(jnp.float32)
    rows = lax.broadcasted_iota(jnp.int32, x.shape, 0)
    x = jnp.where(rows < valid, x, 0.0)

    # (tn, F) -> (tn//8, 8, F): accumulate into wide (8, F) partials with plain
    # VPU adds over the leading axis; the single sublane + cross-lane reduction
    # happens once, in the wrapper.
    xr = x.reshape(tn // _SUBLANE, _SUBLANE, x.shape[-1])
    acc_sum[...] += jnp.sum(xr, axis=0)
    acc_sq[...] += jnp.sum(xr * xr, axis=0)

    @pl.when(j == tiles_per_core - 1)
    def _flush():
        sum_ref[...] = acc_sum[...][None]
        sq_ref[...] = acc_sq[...][None]


# --------------------------------------------------------------------------
# Streaming pass 2 (training + eval): y = x * scale + shift.
# --------------------------------------------------------------------------
def _bn_apply_kernel(x_ref, scale_ref, shift_ref, y_ref):
    x = x_ref[...].astype(jnp.float32)
    y_ref[...] = (x * scale_ref[...] + shift_ref[...]).astype(y_ref.dtype)


def _apply_scale_shift(x, scale2d, shift2d, tn_apply, vmem_limit):
    n, f = x.shape
    nt = _cdiv(n, tn_apply)
    x_spec = pl.BlockSpec((tn_apply, f), lambda i: (i, 0))
    f_spec = pl.BlockSpec((1, f), lambda i: (0, 0))
    cost = pl.CostEstimate(
        flops=2 * n * f, transcendentals=0,
        bytes_accessed=int(x.dtype.itemsize) * 2 * n * f + 8 * f)
    return pl.pallas_call(
        _bn_apply_kernel,
        out_shape=jax.ShapeDtypeStruct((n, f), x.dtype),
        grid=(nt,),
        in_specs=[x_spec, f_spec, f_spec],
        out_specs=x_spec,
        compiler_params=pltpu.CompilerParams(
            dimension_semantics=("parallel",),       # rows independent -> megacore
            vmem_limit_bytes=vmem_limit),
        cost_estimate=cost,
    )(x, scale2d, shift2d)


# --------------------------------------------------------------------------
# Public wrappers.
# --------------------------------------------------------------------------
def batchnorm1d_train(x, weight, bias, running_mean, running_var,
                      momentum=MOMENTUM, eps=EPS, force_streaming=False):
    """Training-mode forward. Returns (y, new_running_mean, new_running_var)."""
    n, f = x.shape
    tn_apply, tn_stats, vmem_limit, tile_target = _choose_tiles(n, f)

    # Fast path: x + y fully resident in VMEM -> single kernel, one HBM pass.
    if not force_streaming and 2 * n * f * 4 <= tile_target:
        w2 = weight.astype(jnp.float32).reshape(1, f)
        b2 = bias.astype(jnp.float32).reshape(1, f)
        rm2 = running_mean.astype(jnp.float32).reshape(1, f)
        rv2 = running_var.astype(jnp.float32).reshape(1, f)
        y, nrm, nrv = pl.pallas_call(
            functools.partial(_bn_train_fused_kernel, momentum=momentum, eps=eps),
            out_shape=(jax.ShapeDtypeStruct((n, f), x.dtype),
                       jax.ShapeDtypeStruct((1, f), jnp.float32),
                       jax.ShapeDtypeStruct((1, f), jnp.float32)),
            compiler_params=pltpu.CompilerParams(vmem_limit_bytes=vmem_limit),
        )(x, w2, b2, rm2, rv2)
        return y, nrm[0], nrv[0]

    # Streaming path, pass 1: per-core (8, F) partial sums.
    nt = _cdiv(n, tn_stats)
    nt_half = _cdiv(nt, 2)
    x_stats_spec = pl.BlockSpec(
        (tn_stats, f),
        lambda i, j: (jnp.minimum(i * nt_half + j, nt - 1), 0))  # clamp; dup tile fully masked
    part_spec = pl.BlockSpec((1, _SUBLANE, f), lambda i, j: (i, 0, 0))
    sums, sqs = pl.pallas_call(
        functools.partial(_bn_stats_kernel, n_rows=n, tn=tn_stats,
                          tiles_per_core=nt_half),
        out_shape=(jax.ShapeDtypeStruct((2, _SUBLANE, f), jnp.float32),) * 2,
        grid=(2, nt_half),
        in_specs=[x_stats_spec],
        out_specs=(part_spec, part_spec),
        scratch_shapes=[pltpu.VMEM((_SUBLANE, f), jnp.float32)] * 2,
        compiler_params=pltpu.CompilerParams(
            dimension_semantics=("parallel", "arbitrary"),
            vmem_limit_bytes=vmem_limit),
        cost_estimate=pl.CostEstimate(
            flops=3 * n * f, transcendentals=0,
            bytes_accessed=int(x.dtype.itemsize) * n * f + 16 * _SUBLANE * f),
    )(x)

    # O(F) finalize in the wrapper (combine the two per-core partials).
    count = float(n * f)
    mean = jnp.sum(sums) / count
    var = jnp.sum(sqs) / count - mean * mean        # biased variance
    inv_std = lax.rsqrt(var + eps)
    scale = weight.astype(jnp.float32) * inv_std
    shift = bias.astype(jnp.float32) - mean * scale
    new_rm = momentum * running_mean.astype(jnp.float32) + (1.0 - momentum) * mean
    new_rv = momentum * running_var.astype(jnp.float32) + (1.0 - momentum) * var

    y = _apply_scale_shift(x, scale.reshape(1, f), shift.reshape(1, f),
                           tn_apply, vmem_limit)
    return y, new_rm, new_rv


def batchnorm1d_eval(x, weight, bias, running_mean, running_var, eps=EPS):
    """Eval-mode forward using running statistics."""
    n, f = x.shape
    tn_apply, _, vmem_limit, _ = _choose_tiles(n, f)
    # O(F) prep: fold weight into the inverse std once.
    inv_std = lax.rsqrt(running_var.astype(jnp.float32) + eps)
    scale = weight.astype(jnp.float32) * inv_std
    shift = bias.astype(jnp.float32) - running_mean.astype(jnp.float32) * scale
    return _apply_scale_shift(x, scale.reshape(1, f), shift.reshape(1, f),
                              tn_apply, vmem_limit)


# --------------------------------------------------------------------------
# Plain-JAX references of the PyTorch semantics.
# --------------------------------------------------------------------------
def _reference_train(x, w, b, rm, rv, momentum=MOMENTUM, eps=EPS):
    mean = jnp.mean(x)
    var = jnp.mean((x - mean) ** 2)
    y = w * ((x - mean) / jnp.sqrt(var + eps)) + b
    return (y,
            momentum * rm + (1.0 - momentum) * mean,
            momentum * rv + (1.0 - momentum) * var)


def _reference_eval(x, w, b, rm, rv, eps=EPS):
    return w * ((x - rm) / jnp.sqrt(rv + eps)) + b


if __name__ == "__main__":
    key = jax.random.PRNGKey(0)
    N, F = 8, 32  # batch, num_features (small, consistent with the MLP usage)

    x = jax.random.normal(key, (N, F), dtype=jnp.float32) * 2.0 + 0.5
    weight = jnp.ones((F,), dtype=jnp.float32)          # nn.Parameter(torch.ones)
    bias = jnp.zeros((F,), dtype=jnp.float32)           # nn.Parameter(torch.zeros)
    running_mean = jnp.zeros((F,), dtype=jnp.float32)   # buffer
    running_var = jnp.ones((F,), dtype=jnp.float32)     # buffer

    # Training + eval forward via the fused VMEM-resident fast path.
    y_tr, new_rm, new_rv = batchnorm1d_train(x, weight, bias, running_mean, running_var)
    y_ev = batchnorm1d_eval(x, weight, bias, running_mean, running_var)
    jax.block_until_ready((y_tr, new_rm, new_rv, y_ev))

    ry, rrm, rrv = _reference_train(x, weight, bias, running_mean, running_var)
    rye = _reference_eval(x, weight, bias, running_mean, running_var)
    assert jnp.allclose(y_tr, ry, atol=1e-4, rtol=1e-4)
    assert jnp.allclose(new_rm, rrm, atol=1e-5, rtol=1e-5)
    assert jnp.allclose(new_rv, rrv, atol=1e-5, rtol=1e-5)
    assert jnp.allclose(y_ev, rye, atol=1e-4, rtol=1e-4)

    # Streaming two-pass path with a ragged batch (N not a multiple of the row
    # tile): exercises masked stats tiles, the clamped duplicate tile, and the
    # OOB-write-dropped apply pass — with no wrapper-side padding or slicing.
    N2 = 300
    x2 = jax.random.normal(jax.random.PRNGKey(1), (N2, F), dtype=jnp.float32) * 1.5 - 0.3
    y2, rm2, rv2 = batchnorm1d_train(x2, weight, bias, running_mean, running_var,
                                     force_streaming=True)
    y2e = batchnorm1d_eval(x2, weight, bias, running_mean, running_var)
    jax.block_until_ready((y2, rm2, rv2, y2e))

    r2y, r2m, r2v = _reference_train(x2, weight, bias, running_mean, running_var)
    r2e = _reference_eval(x2, weight, bias, running_mean, running_var)
    assert jnp.allclose(y2, r2y, atol=1e-4, rtol=1e-4)
    assert jnp.allclose(rm2, r2m, atol=1e-4, rtol=1e-4)
    assert jnp.allclose(rv2, r2v, atol=1e-4, rtol=1e-4)
    assert jnp.allclose(y2e, r2e, atol=1e-4, rtol=1e-4)

    print("KERNEL_OK")
</pallas_src>

<mosaic_0001>
module attributes {stable_mosaic.version = 11 : i64} {
  func.func @_bn_train_fused_kernel(%arg0: memref<8x32xf32, #tpu.memory_space<vmem>>, %arg1: memref<1x32xf32, #tpu.memory_space<vmem>>, %arg2: memref<1x32xf32, #tpu.memory_space<vmem>>, %arg3: memref<1x32xf32, #tpu.memory_space<vmem>>, %arg4: memref<1x32xf32, #tpu.memory_space<vmem>>, %arg5: memref<8x32xf32, #tpu.memory_space<vmem>>, %arg6: memref<1x32xf32, #tpu.memory_space<vmem>>, %arg7: memref<1x32xf32, #tpu.memory_space<vmem>>) attributes {dimension_semantics = [], scalar_prefetch = 0 : i64, scratch_operands = 0 : i64, tpu.core_type = #tpu.core_type<tc>} {
    %c0 = arith.constant 0 : index
    %c0_0 = arith.constant 0 : index
    %0 = vector.load %arg0[%c0, %c0_0] : memref<8x32xf32, #tpu.memory_space<vmem>>, vector<8x32xf32>
    %1 = vector.shape_cast %0 : vector<8x32xf32> to vector<1x8x32xf32>
    %cst = arith.constant dense<0.000000e+00> : vector<1xf32>
    %2 = vector.multi_reduction <add>, %1, %cst [1, 2] : vector<1x8x32xf32> to vector<1xf32>
    %3 = vector.shape_cast %2 : vector<1xf32> to vector<1x1x1xf32>
    %4 = vector.extract %3[0, 0, 0] : f32 from vector<1x1x1xf32>
    %cst_1 = arith.constant 2.560000e+02 : f32
    %5 = arith.divf %4, %cst_1 : f32
    %6 = vector.broadcast %5 : f32 to vector<8x32xf32>
    %7 = arith.subf %0, %6 : vector<8x32xf32>
    %8 = arith.mulf %7, %7 : vector<8x32xf32>
    %9 = vector.shape_cast %8 : vector<8x32xf32> to vector<1x8x32xf32>
    %cst_2 = arith.constant dense<0.000000e+00> : vector<1xf32>
    %10 = vector.multi_reduction <add>, %9, %cst_2 [1, 2] : vector<1x8x32xf32> to vector<1xf32>
    %11 = vector.shape_cast %10 : vector<1xf32> to vector<1x1x1xf32>
    %12 = vector.extract %11[0, 0, 0] : f32 from vector<1x1x1xf32>
    %cst_3 = arith.constant 2.560000e+02 : f32
    %13 = arith.divf %12, %cst_3 : f32
    %cst_4 = arith.constant 9.99999974E-6 : f32
    %14 = arith.addf %13, %cst_4 : f32
    %15 = math.rsqrt %14 : f32
    %c0_5 = arith.constant 0 : index
    %c0_6 = arith.constant 0 : index
    %16 = vector.load %arg1[%c0_5, %c0_6] : memref<1x32xf32, #tpu.memory_space<vmem>>, vector<1x32xf32>
    %17 = vector.broadcast %15 : f32 to vector<1x32xf32>
    %18 = arith.mulf %16, %17 : vector<1x32xf32>
    %c0_7 = arith.constant 0 : index
    %c0_8 = arith.constant 0 : index
    %19 = vector.load %arg2[%c0_7, %c0_8] : memref<1x32xf32, #tpu.memory_space<vmem>>, vector<1x32xf32>
    %20 = vector.broadcast %5 : f32 to vector<1x32xf32>
    %21 = arith.mulf %20, %18 : vector<1x32xf32>
    %22 = arith.subf %19, %21 : vector<1x32xf32>
    %23 = vector.broadcast %18 : vector<1x32xf32> to vector<8x32xf32>
    %24 = arith.mulf %0, %23 : vector<8x32xf32>
    %25 = vector.broadcast %22 : vector<1x32xf32> to vector<8x32xf32>
    %26 = arith.addf %24, %25 : vector<8x32xf32>
    %c0_9 = arith.constant 0 : index
    %c0_10 = arith.constant 0 : index
    %27 = vector.load %arg5[%c0_9, %c0_10] : memref<8x32xf32, #tpu.memory_space<vmem>>, vector<8x32xf32>
    tpu.vector_store %arg5[%c0_9, %c0_10], %26 {strides = array<i32>} : memref<8x32xf32, #tpu.memory_space<vmem>>, vector<8x32xf32>,
    %c0_11 = arith.constant 0 : index
    %c0_12 = arith.constant 0 : index
    %28 = vector.load %arg3[%c0_11, %c0_12] : memref<1x32xf32, #tpu.memory_space<vmem>>, vector<1x32xf32>
    %cst_13 = arith.constant 0.899999976 : f32
    %29 = vector.broadcast %cst_13 : f32 to vector<1x32xf32>
    %30 = arith.mulf %29, %28 : vector<1x32xf32>
    %cst_14 = arith.constant 1.000000e-01 : f32
    %31 = arith.mulf %cst_14, %5 : f32
    %32 = vector.broadcast %31 : f32 to vector<1x32xf32>
    %33 = arith.addf %30, %32 : vector<1x32xf32>
    %c0_15 = arith.constant 0 : index
    %c0_16 = arith.constant 0 : index
    %34 = vector.load %arg6[%c0_15, %c0_16] : memref<1x32xf32, #tpu.memory_space<vmem>>, vector<1x32xf32>
    tpu.vector_store %arg6[%c0_15, %c0_16], %33 {strides = array<i32>} : memref<1x32xf32, #tpu.memory_space<vmem>>, vector<1x32xf32>,
    %c0_17 = arith.constant 0 : index
    %c0_18 = arith.constant 0 : index
    %35 = vector.load %arg4[%c0_17, %c0_18] : memref<1x32xf32, #tpu.memory_space<vmem>>, vector<1x32xf32>
    %cst_19 = arith.constant 0.899999976 : f32
    %36 = vector.broadcast %cst_19 : f32 to vector<1x32xf32>
    %37 = arith.mulf %36, %35 : vector<1x32xf32>
    %cst_20 = arith.constant 1.000000e-01 : f32
    %38 = arith.mulf %cst_20, %13 : f32
    %39 = vector.broadcast %38 : f32 to vector<1x32xf32>
    %40 = arith.addf %37, %39 : vector<1x32xf32>
    %c0_21 = arith.constant 0 : index
    %c0_22 = arith.constant 0 : index
    %41 = vector.load %arg7[%c0_21, %c0_22] : memref<1x32xf32, #tpu.memory_space<vmem>>, vector<1x32xf32>
    tpu.vector_store %arg7[%c0_21, %c0_22], %40 {strides = array<i32>} : memref<1x32xf32, #tpu.memory_space<vmem>>, vector<1x32xf32>,
    return
  }
}

</mosaic_0001>

<bundles_post_ra>
// kernel: tpu_custom_call.1
= control target key start
LH: loop header
LB: loop body
LE: loop exit
PB: predicated region body
PF: predicated region fallthrough
CT: control target
= control target key end

     0   :  { %13 = vsyncpa [#allocation3], 0  ;;  %s420_s0 = inlined_call_operand.hbm [shape: f32[8,32], index: 0, kind: input, shape index: {}]   ;;  %s421_s1 = inlined_call_operand.hbm [shape: f32[1,32], index: 1, kind: input, shape index: {}]   ;;  %s422_s2 = inlined_call_operand.vmem [shape: f32[1,32], index: 2, kind: input, shape index: {}]   ;;  %s423_s3 = inlined_call_operand.vmem [shape: f32[1,32], index: 3, kind: input, shape index: {}]   ;;  %s424_s4 = inlined_call_operand.vmem [shape: f32[1,32], index: 4, kind: input, shape index: {}]   ;;  %s425_s5 = inlined_call_operand.hbm [shape: f32[8,32], index: 5, kind: output, shape index: {0}]   ;;  %s426_s6 = inlined_call_operand.hbm [shape: f32[1,32], index: 6, kind: output, shape index: {1}]   ;;  %s427_s7 = inlined_call_operand.hbm [shape: f32[1,32], index: 7, kind: output, shape index: {2}]  }
   0x1   :  { %14 = vsyncpa [#allocation6], 0 }
   0x2   :  { %15 = vsyncpa [#allocation4], 0 }
   0x3   :  { %16 = vsyncpa [#allocation9], 0  ;;  %s22_s26 = sshll.u32 %s420_s0, 4  ;;  %s332_s27 = smov [#allocation2]   ;;  %s23_s26 = int_to_ptr.hbm [resolvable:$true] %s22_s26 }
   0x4   :  { %s24_s28 = sshll.u32 %s332_s27, 4  ;;  %s33_s8 = sshll.u32 %s421_s1, 4  ;;  %s25_s28 = int_to_ptr.vmem [resolvable:$true] %s24_s28  ;;  %s34_s8 = int_to_ptr.hbm [resolvable:$true] %s33_s8 }
   0x5   :  { %27 = dma.hbm_to_vmem [thread:$0]  %s23_s26, 128, %s25_s28, [#allocation3]  }
   0x6   :  { %s333_s9 = smov [#allocation5]  }
   0x7   :  { %s35_s10 = sshll.u32 %s333_s9, 4  ;;  %s36_s10 = int_to_ptr.vmem [resolvable:$true] %s35_s10 }
   0x8   :  { %38 = dma.hbm_to_vmem [thread:$0]  %s34_s8, 16, %s36_s10, [#allocation6]  }
   0x9   :  { %324 = dma.done.wait [#allocation3], 128  }
   0xa   :  { %325 = vsyncadd [#allocation3], 4294967168 }
   0xb   :  { %326 = dma.done.wait [#allocation6], 16  }
   0xc   :  { %327 = vsyncadd [#allocation6], 4294967280  ;;  %vm54_vm0 = vcmask 261120   ;;  %v384_v0 = vld [vmem:[#allocation2] sm:$0xff]  ;;  %v334_v2 = vmov 256.0   ;;  %vm129_vm2 = vcmask 253952  }
   0xd   :  { %v55_v1 = vsel %vm54_vm0, %v384_v0, 0.0  ;;  %200 = vrcp.f32 %v334_v2  ;;  %v124_v16 = vld [vmem:[%s423_s3] sm:$0x1]  ;;  %s335_s3 = smov [#allocation8]   ;;  %s155_s18 = sshll.u32 %s426_s6, 4  ;;  %s156_s18 = int_to_ptr.hbm [resolvable:$true] %s155_s18 }
   0xe   :  { %56 = vadd.xlane.f32.xlu0 %v55_v1  ;;  %v125_v17 = vmul.f32 0.9, %v124_v16  ;;  %s153_s15 = sshll.u32 %s335_s3, 4  ;;  %v131_v31 = vld [vmem:[%s424_s4] sm:$0x1]  ;;  %s336_s23 = smov [#allocation10]   ;;  %s154_s15 = int_to_ptr.vmem [resolvable:$true] %s153_s15 }
   0xf   :  { %v132_v32 = vmul.f32 0.9, %v131_v31  ;;  %s164_s24 = sshll.u32 %s336_s23, 4  ;;  %s166_s27 = sshll.u32 %s427_s7, 4  ;;  %v109_v43 = vld [vmem:[#allocation5] sm:$0x1]  ;;  %s165_s24 = int_to_ptr.vmem [resolvable:$true] %s164_s24  ;;  %s167_s27 = int_to_ptr.hbm [resolvable:$true] %s166_s27 }
  0x10   :  { %v112_v46 = vld [vmem:[%s422_s2] sm:$0x1]  ;;  %s337_s30 = smov [#allocation7]  }
  0x11   :  { %s142_s8 = sshll.u32 %s337_s30, 4  ;;  %s143_s8 = int_to_ptr.vmem [resolvable:$true] %s142_s8 }
  0x13   :  { %v201_v3 = vpop.eup %200 }
  0x14   :  { %v66_v4 = vmul.f32 256.0, %v201_v3  ;;  %vm70_vm1 = vweird.f32 %v201_v3 }
  0x16   :  { %v67_v5 = vsub.f32 1.0, %v66_v4 }
  0x18   :  { %v68_v9 = vmul.f32 %v201_v3, %v67_v5 }
  0x1a   :  { %v69_v12 = vadd.f32 %v201_v3, %v68_v9 }
  0x1c   :  { %v71_v15 = vsel %vm70_vm1, %v201_v3, %v69_v12 }
  0x81   :  { %v57_v6 = vpop.xlane.xlu0 %56 }
  0x82   :  { %v58_v7 = vrot.slane %v57_v6, 4 }
  0x84   :  { %v59_v8 = vadd.f32 %v58_v7, %v57_v6 }
  0x86   :  { %v60_v10 = vrot.slane %v59_v8, 2 }
  0x88   :  { %v61_v11 = vadd.f32 %v60_v10, %v59_v8 }
  0x8a   :  { %v62_v13 = vrot.slane %v61_v11, 1 }
  0x8c   :  { %v63_v14 = vadd.f32 %v62_v13, %v61_v11 }
  0x8e   :  { %186 = vpush %v63_v14 }
  0x8f   :  { %188 = vpush %v71_v15 }
  0xbf   :  { %s187_s0 = spop %186 }
  0xc0   :  { %s391_s12 = spop %188 }
  0xc1   :  { %s394_s13 = smul.f32 %s391_s12, %s187_s0  ;;  %s144_s0 = sshll.u32 %s425_s5, 4  ;;  %s145_s0 = int_to_ptr.hbm [resolvable:$true] %s144_s0 }
  0xc3   :  { %v74_v18 = vstv %s394_s13  ;;  %s126_s14 = smul.f32 0.1, %s394_s13 }
  0xc4   :  { %v75_v19 = vsub.f32 %v384_v0, %v74_v18 }
  0xc5   :  { %v127_v20 = vstv %s126_s14 }
  0xc6   :  { %v128_v21 = vadd.f32 %v127_v20, %v125_v17  ;;  %v76_v22 = vmul.f32 %v75_v19, %v75_v19 }
  0xc8   :  { %v77_v23 = vsel %vm54_vm0, %v76_v22, 0.0  ;;  %130 = vst.msk [vmem:[#allocation8] sm:$0x1] %vm129_vm2, %v128_v21 }
  0xc9   :  { %78 = vadd.xlane.f32.xlu0 %v77_v23  ;;  %158 = dma.vmem_to_hbm [thread:$0]  %s154_s15, 16, %s156_s18, [#allocation9]  }
 0x13c   :  { %v79_v24 = vpop.xlane.xlu0 %78 }
 0x13d   :  { %v80_v25 = vrot.slane %v79_v24, 4 }
 0x13f   :  { %v81_v26 = vadd.f32 %v80_v25, %v79_v24 }
 0x141   :  { %v82_v27 = vrot.slane %v81_v26, 2 }
 0x143   :  { %v83_v28 = vadd.f32 %v82_v27, %v81_v26 }
 0x145   :  { %v84_v29 = vrot.slane %v83_v28, 1 }
 0x147   :  { %v85_v30 = vadd.f32 %v84_v29, %v83_v28 }
 0x149   :  { %190 = vpush %v85_v30 }
 0x17a   :  { %s191_s21 = spop %190 }
 0x17b   :  { %s95_s22 = smul.f32 %s191_s21, %s391_s12 }
 0x17d   :  { %s96_s28 = sadd.f32 1e-05, %s95_s22  ;;  %s133_s29 = smul.f32 0.1, %s95_s22 }
 0x17f   :  { %v97_v33 = vstv %s96_s28  ;;  %v134_v34 = vstv %s133_s29 }
 0x180   :  { %202 = vrsqrt.f32 %v97_v33  ;;  %v135_v35 = vadd.f32 %v134_v34, %v132_v32  ;;  %vm104_vm4 = vweird.f32 %v97_v33 }
 0x182   :  { %136 = vst.msk [vmem:[#allocation10] sm:$0x1] %vm129_vm2, %v135_v35 }
 0x183   :  { %169 = dma.vmem_to_hbm [thread:$0]  %s165_s24, 16, %s167_s27, [#allocation9]  }
 0x186   :  { %v203_v36 = vpop.eup %202 }
 0x187   :  { %v99_v37 = vmul.f32 %v203_v36, %v97_v33  ;;  %vm105_vm3 = vweird.f32 %v203_v36 }
 0x188   :  { %vm106_vm5 = vmor %vm104_vm4, %vm105_vm3 }
 0x189   :  { %v100_v38 = vmul.f32 %v203_v36, %v99_v37 }
 0x18b   :  { %v101_v39 = vmul.f32 0.5, %v100_v38 }
 0x18d   :  { %v102_v40 = vsub.f32 1.5, %v101_v39 }
 0x18f   :  { %v103_v41 = vmul.f32 %v203_v36, %v102_v40 }
 0x191   :  { %v107_v42 = vsel %vm106_vm5, %v203_v36, %v103_v41 }
 0x192   :  { %192 = vpush %v107_v42 }
 0x1c3   :  { %s193_s4 = spop %192 }
 0x1c4   :  { %v110_v44 = vstv %s193_s4 }
 0x1c5   :  { %v111_v45 = vmul.f32 %v110_v44, %v109_v43 }
 0x1c7   :  { %v113_v47 = vmul.f32 %v111_v45, %v74_v18  ;;  %v116_v48 = vperm.slane %v111_v45, 0 }
 0x1c9   :  { %v114_v49 = vsub.f32 %v112_v46, %v113_v47  ;;  %v118_v50 = vmul.f32 %v116_v48, %v384_v0 }
 0x1cb   :  { %v120_v51 = vperm.slane %v114_v49, 0 }
 0x1cd   :  { %v122_v52 = vadd.f32 %v120_v51, %v118_v50 }
 0x1cf   :  { %123 = vst.msk [vmem:[#allocation7] sm:$0xff] %vm54_vm0, %v122_v52 }
 0x1d0   :  { %147 = dma.vmem_to_hbm [thread:$0]  %s143_s8, 128, %s145_s0, [#allocation4]  }
 0x1d1   :  { %328 = dma.done.wait [#allocation4], 128  }
 0x1d2   :  { %329 = vsyncadd [#allocation4], 4294967168 }
 0x1d3   :  { %330 = dma.done.wait [#allocation9], 32  }
 0x1d4   :  { %331 = vsyncadd [#allocation9], 4294967264 }
 0x1d5   :  { %182 = vsyncpa [#allocation3], 1 }
 0x1d6   :  { %183 = vsyncpa [#allocation6], 1 }
 0x1d7   :  { %184 = vsyncpa [#allocation4], 1 }
 0x1d8   :  { %185 = vsyncpa [#allocation9], 1 }

</bundles_post_ra>
